<compile_context>
chip_gen: v7x
topology: tpu7x:2x2x1
jax: 0.10.0
libtpu: 0.0.40
codegen_flags: <defaults>
</compile_context>

<pallas_src>
import math

import jax
import jax.numpy as jnp
from jax.experimental import pallas as pl
from jax.experimental.pallas import tpu as pltpu


def _round_up(x, m):
    return ((x + m - 1) // m) * m


def _make_prenet_kernel(n_layers):
    """Kernel: x_ref, (w1, b1, w2, b2, ...), o_ref — all tiles already in VMEM."""

    def kernel(x_ref, *refs):
        o_ref = refs[-1]
        h = x_ref[...]
        for l in range(n_layers):
            w = refs[2 * l][...]        # (in_l, out_l), pre-transposed in wrapper
            b = refs[2 * l + 1][...]    # (1, out_l)
            h = jnp.dot(h, w, preferred_element_type=jnp.float32) + b
            h = jnp.maximum(h, 0.0)     # ReLU
            # Dropout(0.5): identity in eval mode (see TODO at top of file).
        o_ref[...] = h.astype(o_ref.dtype)

    return kernel


def prenet_forward(x, weights, biases, *, block_rows=256):
    """Fused Prenet forward (eval mode).

    x:        (..., in_dim) float32
    weights:  list of PyTorch-layout Linear weights, weights[i]: (out_i, in_i)
    biases:   list of biases, biases[i]: (out_i,)
    returns:  (..., out_last)
    """
    n_layers = len(weights)
    assert n_layers == len(biases) and n_layers >= 1
    in_dim = x.shape[-1]
    out_dim = int(weights[-1].shape[0])
    lead = x.shape[:-1]

    # Flatten all leading dims into one "rows" axis (contiguous reshape: free).
    M = 1
    for d in lead:
        M *= int(d)
    x2 = x.reshape(M, in_dim)

    # Row tile: as tall as possible (<= block_rows) to fill the MXU and amortize
    # per-grid-step overhead; pad rows only if M does not divide evenly.
    TM = min(block_rows, _round_up(max(M, 8), 8))
    Mp = _round_up(M, TM)
    if Mp != M:
        x2 = jnp.pad(x2, ((0, Mp - M), (0, 0)))

    args = [x2]
    in_specs = [pl.BlockSpec((TM, in_dim), lambda i: (i, 0))]
    for w, b in zip(weights, biases):
        wt = jnp.transpose(w)                       # (in_l, out_l) so h @ wt == h @ W^T
        args.append(wt)
        in_specs.append(pl.BlockSpec(wt.shape, lambda i: (0, 0)))     # resident in VMEM
        b2 = b.reshape(1, -1)
        args.append(b2)
        in_specs.append(pl.BlockSpec(b2.shape, lambda i: (0, 0)))     # resident in VMEM

    out = pl.pallas_call(
        _make_prenet_kernel(n_layers),
        out_shape=jax.ShapeDtypeStruct((Mp, out_dim), x.dtype),
        grid_spec=pltpu.PrefetchScalarGridSpec(
            num_scalar_prefetch=0,
            grid=(Mp // TM,),
            in_specs=in_specs,
            out_specs=pl.BlockSpec((TM, out_dim), lambda i: (i, 0)),
        ),
        compiler_params=pltpu.CompilerParams(
            dimension_semantics=("parallel",)),
    )(*args)

    return out[:M].reshape(lead + (out_dim,))


def _reference_prenet(x, weights, biases):
    """Pure-JAX reference mirroring the PyTorch forward (eval mode)."""
    h = x
    for w, b in zip(weights, biases):
        h = jnp.maximum(h @ w.T + b, 0.0)
    return h


if __name__ == "__main__":
    # Small shapes consistent with the module: Prenet(in_dim=80, sizes=[256, 128])
    # applied to a (batch=2, seq=16, in_dim=80) sequence.
    B, T, in_dim = 2, 16, 80
    sizes = [256, 128]

    key = jax.random.PRNGKey(0)
    keys = jax.random.split(key, 2 * len(sizes) + 1)

    # nn.Linear default init: U(-1/sqrt(fan_in), 1/sqrt(fan_in)) for weight & bias.
    weights, biases = [], []
    prev = in_dim
    for li, out in enumerate(sizes):
        bound = 1.0 / math.sqrt(prev)
        w = jax.random.uniform(keys[2 * li], (out, prev), jnp.float32, -bound, bound)
        b = jax.random.uniform(keys[2 * li + 1], (out,), jnp.float32, -bound, bound)
        weights.append(w)
        biases.append(b)
        prev = out

    x = jax.random.normal(keys[-1], (B, T, in_dim), dtype=jnp.float32)

    out = prenet_forward(x, weights, biases)
    out = jax.block_until_ready(out)

    ref = jax.block_until_ready(_reference_prenet(x, weights, biases))

    assert out.shape == (B, T, sizes[-1]), out.shape
    assert jnp.allclose(out, ref, atol=1e-5, rtol=1e-5), "mismatch vs reference"
    print("KERNEL_OK")
</pallas_src>

<mosaic_0001>
module attributes {stable_mosaic.version = 11 : i64} {
  func.func @kernel(%arg0: i32, %arg1: memref<32x80xf32, #tpu.memory_space<vmem>>, %arg2: memref<80x256xf32, #tpu.memory_space<vmem>>, %arg3: memref<1x256xf32, #tpu.memory_space<vmem>>, %arg4: memref<256x128xf32, #tpu.memory_space<vmem>>, %arg5: memref<1x128xf32, #tpu.memory_space<vmem>>, %arg6: memref<32x128xf32, #tpu.memory_space<vmem>>) attributes {dimension_semantics = [#tpu.dimension_semantics<parallel>], iteration_bounds = array<i64: 1>, scalar_prefetch = 0 : i64, scratch_operands = 0 : i64, tpu.core_type = #tpu.core_type<tc>, window_params = [{transform_indices = @transform_0, window_bounds = array<i64: 32, 80>}, {pipeline_mode = #tpu.pipeline_mode<synchronous>, transform_indices = @transform_1, window_bounds = array<i64: 80, 256>}, {pipeline_mode = #tpu.pipeline_mode<synchronous>, transform_indices = @transform_2, window_bounds = array<i64: 1, 256>}, {pipeline_mode = #tpu.pipeline_mode<synchronous>, transform_indices = @transform_3, window_bounds = array<i64: 256, 128>}, {pipeline_mode = #tpu.pipeline_mode<synchronous>, transform_indices = @transform_4, window_bounds = array<i64: 1, 128>}, {transform_indices = @transform_5, window_bounds = array<i64: 32, 128>}]} {
    %c0 = arith.constant 0 : index
    %c0_0 = arith.constant 0 : index
    %0 = vector.load %arg1[%c0, %c0_0] : memref<32x80xf32, #tpu.memory_space<vmem>>, vector<32x80xf32>
    %c0_1 = arith.constant 0 : index
    %c0_2 = arith.constant 0 : index
    %1 = vector.load %arg2[%c0_1, %c0_2] : memref<80x256xf32, #tpu.memory_space<vmem>>, vector<80x256xf32>
    %c0_3 = arith.constant 0 : index
    %c0_4 = arith.constant 0 : index
    %2 = vector.load %arg3[%c0_3, %c0_4] : memref<1x256xf32, #tpu.memory_space<vmem>>, vector<1x256xf32>
    %cst = arith.constant dense<0.000000e+00> : vector<32x256xf32>
    %3 = tpu.matmul %0, %1, %cst {dimension_numbers = #tpu.dot_dimension_numbers<[1], [0], [0], [1], [0, 0, 1, 1], [], []>} : vector<32x80xf32>, vector<80x256xf32>, vector<32x256xf32> -> vector<32x256xf32>
    %4 = vector.broadcast %2 : vector<1x256xf32> to vector<32x256xf32>
    %5 = arith.addf %3, %4 : vector<32x256xf32>
    %cst_5 = arith.constant 0.000000e+00 : f32
    %6 = vector.broadcast %cst_5 : f32 to vector<32x256xf32>
    %7 = arith.maximumf %5, %6 : vector<32x256xf32>
    %c0_6 = arith.constant 0 : index
    %c0_7 = arith.constant 0 : index
    %8 = vector.load %arg4[%c0_6, %c0_7] : memref<256x128xf32, #tpu.memory_space<vmem>>, vector<256x128xf32>
    %c0_8 = arith.constant 0 : index
    %c0_9 = arith.constant 0 : index
    %9 = vector.load %arg5[%c0_8, %c0_9] : memref<1x128xf32, #tpu.memory_space<vmem>>, vector<1x128xf32>
    %cst_10 = arith.constant dense<0.000000e+00> : vector<32x128xf32>
    %10 = tpu.matmul %7, %8, %cst_10 {dimension_numbers = #tpu.dot_dimension_numbers<[1], [0], [0], [1], [0, 0, 1, 1], [], []>} : vector<32x256xf32>, vector<256x128xf32>, vector<32x128xf32> -> vector<32x128xf32>
    %11 = vector.broadcast %9 : vector<1x128xf32> to vector<32x128xf32>
    %12 = arith.addf %10, %11 : vector<32x128xf32>
    %cst_11 = arith.constant 0.000000e+00 : f32
    %13 = vector.broadcast %cst_11 : f32 to vector<32x128xf32>
    %14 = arith.maximumf %12, %13 : vector<32x128xf32>
    %c0_12 = arith.constant 0 : index
    %c0_13 = arith.constant 0 : index
    %15 = vector.load %arg6[%c0_12, %c0_13] : memref<32x128xf32, #tpu.memory_space<vmem>>, vector<32x128xf32>
    tpu.vector_store %arg6[%c0_12, %c0_13], %14 {strides = array<i32>} : memref<32x128xf32, #tpu.memory_space<vmem>>, vector<32x128xf32>,
    return
  }
  func.func @transform_0(%arg0: i32) -> (i32, i32) {
    %c0_i32 = arith.constant 0 : i32
    %c0_i32_0 = arith.constant 0 : i32
    return %arg0, %c0_i32 : i32, i32
  }
  func.func @transform_1(%arg0: i32) -> (i32, i32) {
    %c0_i32 = arith.constant 0 : i32
    %c0_i32_0 = arith.constant 0 : i32
    %c0_i32_1 = arith.constant 0 : i32
    return %c0_i32, %c0_i32_0 : i32, i32
  }
  func.func @transform_2(%arg0: i32) -> (i32, i32) {
    %c0_i32 = arith.constant 0 : i32
    %c0_i32_0 = arith.constant 0 : i32
    %c0_i32_1 = arith.constant 0 : i32
    return %c0_i32, %c0_i32_0 : i32, i32
  }
  func.func @transform_3(%arg0: i32) -> (i32, i32) {
    %c0_i32 = arith.constant 0 : i32
    %c0_i32_0 = arith.constant 0 : i32
    %c0_i32_1 = arith.constant 0 : i32
    return %c0_i32, %c0_i32_0 : i32, i32
  }
  func.func @transform_4(%arg0: i32) -> (i32, i32) {
    %c0_i32 = arith.constant 0 : i32
    %c0_i32_0 = arith.constant 0 : i32
    %c0_i32_1 = arith.constant 0 : i32
    return %c0_i32, %c0_i32_0 : i32, i32
  }
  func.func @transform_5(%arg0: i32) -> (i32, i32) {
    %c0_i32 = arith.constant 0 : i32
    %c0_i32_0 = arith.constant 0 : i32
    return %arg0, %c0_i32 : i32, i32
  }
}

</mosaic_0001>

<bundles_post_ra>
// kernel: tpu_custom_call.1
= control target key start
LH: loop header
LB: loop body
LE: loop exit
PB: predicated region body
PF: predicated region fallthrough
CT: control target
= control target key end

     0   :  { %10 = vsyncpa [#allocation3], 0  ;;  %s672_s0 = inlined_call_operand.hbm [shape: f32[32,80], index: 0, kind: input, shape index: {}]   ;;  %s673_s1 = inlined_call_operand.hbm [shape: f32[80,256], index: 1, kind: input, shape index: {}]   ;;  %s674_s2 = inlined_call_operand.vmem [shape: f32[1,256], index: 2, kind: input, shape index: {}]   ;;  %s675_s3 = inlined_call_operand.hbm [shape: f32[256,128], index: 3, kind: input, shape index: {}]   ;;  %s676_s4 = inlined_call_operand.vmem [shape: f32[1,128], index: 4, kind: input, shape index: {}]   ;;  %s677_s5 = inlined_call_operand.hbm [shape: f32[32,128], index: 5, kind: output, shape index: {}]  }
   0x1   :  { %11 = vsyncpa [#allocation6], 0 }
   0x2   :  { %12 = vsyncpa [#allocation4], 0  ;;  %s562_s18 = smov [#allocation5]   ;;  %s468_s22 = scalar_lea.hbm %s673_s1, 2560 }
   0x3   :  { %s30_s19 = sshll.u32 %s562_s18, 4  ;;  %p469_p0 = scmp.ne.s32.totalorder %s673_s1, %s468_s22  ;;  %s31_s19 = int_to_ptr.vmem [resolvable:$true] %s30_s19 }
   0x4   :  { %p472_p1 = scmp.lt.u32.totalorder %s468_s22, %s673_s1 }
   0x6   :  { %p474_p2 = pnand %p472_p1, %p469_p0 }
   0x8   :  { %477 = shalt.err (!%p474_p2)
}
   0x9   :  { %s478_s27 = scalar_lea.vmem %s31_s19, 2560  ;;  %p483_p4 = scmp.lt.s32.totalorder %s31_s19, %s31_s19 }
   0xa   :  { %p479_p3 = scmp.ne.s32.totalorder %s31_s19, %s478_s27  ;;  %p484_p5 = scmp.lt.s32.totalorder %s478_s27, %s478_s27 }
   0xc   :  { %p485_p6 = por %p484_p5, %p483_p4 }
   0xe   :  { %p486_p7 = pnand %p485_p6, %p479_p3 }
  0x10   :  { %489 = shalt.err (!%p486_p7)
}
  0x11   :  { %s563_s28 = smov 256   ;;  %s564_s29 = smov 16  }
  0x12   :  { %36 = dma.hbm_to_vmem [thread:$0]  %s673_s1, 2560, %s31_s19, [#allocation6], %s563_s28, %s563_s28, %s564_s29  }
  0x13   :  { %s565_s7 = smov [#allocation2]   ;;  %s490_s11 = scalar_lea.hbm %s672_s0, 512 }
  0x14   :  { %s18_s8 = sshll.u32 %s565_s7, 4  ;;  %p491_p8 = scmp.ne.s32.totalorder %s672_s0, %s490_s11  ;;  %s19_s8 = int_to_ptr.vmem [resolvable:$true] %s18_s8 }
  0x15   :  { %p494_p9 = scmp.lt.u32.totalorder %s490_s11, %s672_s0 }
  0x17   :  { %p496_p10 = pnand %p494_p9, %p491_p8 }
  0x19   :  { %499 = shalt.err (!%p496_p10)
}
  0x1a   :  { %s500_s16 = scalar_lea.vmem %s19_s8, 512  ;;  %p505_p12 = scmp.lt.s32.totalorder %s19_s8, %s19_s8 }
  0x1b   :  { %p501_p11 = scmp.ne.s32.totalorder %s19_s8, %s500_s16  ;;  %p506_p13 = scmp.lt.s32.totalorder %s500_s16, %s500_s16 }
  0x1d   :  { %p507_p0 = por %p506_p13, %p505_p12 }
  0x1f   :  { %p508_p1 = pnand %p507_p0, %p501_p11 }
  0x21   :  { %511 = shalt.err (!%p508_p1)
}
  0x22   :  { %s566_s1 = smov 128   ;;  %s567_s17 = smov 8  }
  0x23   :  { %24 = dma.hbm_to_vmem [thread:$0]  %s672_s0, 512, %s19_s8, [#allocation3], %s566_s1, %s566_s1, %s567_s17  }
  0x24   :  { %s568_s20 = smov [#allocation7]   ;;  %s512_s24 = scalar_lea.hbm %s675_s3, 4096 }
  0x25   :  { %s44_s21 = sshll.u32 %s568_s20, 4  ;;  %p513_p2 = scmp.ne.s32.totalorder %s675_s3, %s512_s24  ;;  %s45_s21 = int_to_ptr.vmem [resolvable:$true] %s44_s21 }
  0x26   :  { %p516_p3 = scmp.lt.u32.totalorder %s512_s24, %s675_s3 }
  0x28   :  { %p518_p4 = pnand %p516_p3, %p513_p2 }
  0x2a   :  { %521 = shalt.err (!%p518_p4)
}
  0x2b   :  { %s522_s29 = scalar_lea.vmem %s45_s21, 4096  ;;  %p527_p6 = scmp.lt.s32.totalorder %s45_s21, %s45_s21 }
  0x2c   :  { %p523_p5 = scmp.ne.s32.totalorder %s45_s21, %s522_s29  ;;  %p528_p7 = scmp.lt.s32.totalorder %s522_s29, %s522_s29 }
  0x2e   :  { %p529_p8 = por %p528_p7, %p527_p6 }
  0x30   :  { %p530_p9 = pnand %p529_p8, %p523_p5 }
  0x32   :  { %533 = shalt.err (!%p530_p9)
}
  0x33   :  { %50 = dma.hbm_to_vmem [thread:$0]  %s675_s3, 4096, %s45_s21, [#allocation6], %s566_s1, %s566_s1, %s567_s17  }
  0x34   :  { %556 = dma.done.wait [#allocation3], 512  }
  0x35   :  { %557 = vsyncadd [#allocation3], 4294966784 }
  0x36   :  { %558 = dma.done.wait [#allocation6], 6656  }
  0x37   :  { %559 = vsyncadd [#allocation6], 4294960640  ;;  %v569_v0 = vmov 0.0   ;;  %v67_v1 = vld [vmem:[#allocation5 + $0x8] sm:$0xff]  ;;  %v69_v2 = vld [vmem:[#allocation5 + $0x18] sm:$0xff]  ;;  %vm98_vm0 = vcmask 654336  }
  0x38   :  { %175 = vmatprep.mubr.f32.mxu0 %v569_v0  ;;  %v66_v3 = vld [vmem:[#allocation5] sm:$0xff]  ;;  %v407_v4 = vpack.c.bf16 %v69_v2, %v67_v1  ;;  %v68_v5 = vld [vmem:[#allocation5 + $0x10] sm:$0xff]  ;;  %v71_v6 = vld [vmem:[#allocation5 + $0x28] sm:$0xff] }
  0x39   :  { %v73_v7 = vld [vmem:[#allocation5 + $0x38] sm:$0xff]  ;;  %v409_v8 = vpack.c.bf16 %v68_v5, %v66_v3  ;;  %v70_v10 = vld [vmem:[#allocation5 + $0x20] sm:$0xff]  ;;  %v72_v11 = vld [vmem:[#allocation5 + $0x30] sm:$0xff] }
  0x3a   :  { %v411_v9 = vpack.c.bf16 %v73_v7, %v71_v6  ;;  %v75_v12 = vld [vmem:[#allocation5 + $0x48] sm:$0xff]  ;;  %408 = vmatprep.subr.bf16.mxu0 %v407_v4  ;;  %v77_v13 = vld [vmem:[#allocation5 + $0x58] sm:$0xff]  ;;  %v413_v14 = vpack.c.bf16 %v72_v11, %v70_v10  ;;  %v74_v16 = vld [vmem:[#allocation5 + $0x40] sm:$0xff] }
  0x3b   :  { %410 = vmatpush1.bf16.msra.mxu0 %v409_v8  ;;  %v415_v15 = vpack.c.bf16 %v77_v13, %v75_v12  ;;  %v76_v17 = vld [vmem:[#allocation5 + $0x50] sm:$0xff]  ;;  %v79_v18 = vld [vmem:[#allocation5 + $0x68] sm:$0xff]  ;;  %v81_v19 = vld [vmem:[#allocation5 + $0x78] sm:$0xff] }
  0x3c   :  { %412 = vmatprep.subr.bf16.mxu0 %v411_v9  ;;  %v78_v20 = vld [vmem:[#allocation5 + $0x60] sm:$0xff]  ;;  %v80_v21 = vld [vmem:[#allocation5 + $0x70] sm:$0xff]  ;;  %v417_v22 = vpack.c.bf16 %v76_v17, %v74_v16  ;;  %v83_v23 = vld [vmem:[#allocation5 + $0x88] sm:$0xff]  ;;  %v419_v28 = vpack.c.bf16 %v81_v19, %v79_v18 }
  0x3d   :  { %v85_v24 = vld [vmem:[#allocation5 + $0x98] sm:$0xff]  ;;  %v224_v25 = vld [vmem:[#allocation7 + $0x80] sm:$0xff]  ;;  %v225_v26 = vld [vmem:[#allocation7 + $0x88] sm:$0xff]  ;;  %v421_v39 = vpack.c.bf16 %v80_v21, %v78_v20  ;;  %v88_v20 = vlaneseq }
  0x3e   :  { %v208_v27 = vld [vmem:[#allocation7] sm:$0xff]  ;;  %v427_v29 = vpack.c.bf16 %v225_v26, %v224_v25  ;;  %v209_v30 = vld [vmem:[#allocation7 + $0x8] sm:$0xff]  ;;  %v226_v31 = vld [vmem:[#allocation7 + $0x90] sm:$0xff]  ;;  %v423_v42 = vpack.c.bf16 %v85_v24, %v83_v23 }
  0x3f   :  { %414 = vmatpush1.bf16.msra.mxu0 %v413_v14  ;;  %v227_v32 = vld [vmem:[#allocation7 + $0x98] sm:$0xff]  ;;  %v429_v33 = vpack.c.bf16 %v209_v30, %v208_v27  ;;  %v210_v35 = vld [vmem:[#allocation7 + $0x10] sm:$0xff]  ;;  %v228_v37 = vld [vmem:[#allocation7 + $0xa0] sm:$0xff]  ;;  %v89_v21 = vshrl.u32 %v88_v20, 7 }
  0x40   :  { %416 = vmatprep.subr.bf16.mxu0 %v415_v15  ;;  %v431_v34 = vpack.c.bf16 %v227_v32, %v226_v31  ;;  %v211_v36 = vld [vmem:[#allocation7 + $0x18] sm:$0xff]  ;;  %428 = vmatprep.subr.bf16.mxu1 %v427_v29  ;;  %v229_v38 = vld [vmem:[#allocation7 + $0xa8] sm:$0xff]  ;;  %v82_v40 = vld [vmem:[#allocation5 + $0x80] sm:$0xff] }
  0x41   :  { %430 = vmatpush3.bf16.msra.mxu1 %v429_v33  ;;  %v433_v41 = vpack.c.bf16 %v211_v36, %v210_v35  ;;  %v84_v43 = vld [vmem:[#allocation5 + $0x90] sm:$0xff]  ;;  %v435_v44 = vpack.c.bf16 %v229_v38, %v228_v37  ;;  %v212_v45 = vld [vmem:[#allocation7 + $0x20] sm:$0xff]  ;;  %v213_v46 = vld [vmem:[#allocation7 + $0x28] sm:$0xff]  ;;  %v94_v23 = vsub.s32 1, %v89_v21 }
  0x42   :  { %432 = vmatprep.subr.bf16.mxu1 %v431_v34  ;;  %v230_v47 = vld [vmem:[#allocation7 + $0xb0] sm:$0xff]  ;;  %v231_v48 = vld [vmem:[#allocation7 + $0xb8] sm:$0xff]  ;;  %v425_v49 = vpack.c.bf16 %v84_v43, %v82_v40  ;;  %v437_v50 = vpack.c.bf16 %v213_v46, %v212_v45  ;;  %v232_v54 = vld [vmem:[#allocation7 + $0xc0] sm:$0xff] }
  0x43   :  { %418 = vmatpush1.bf16.msra.mxu0 %v417_v22  ;;  %v439_v51 = vpack.c.bf16 %v231_v48, %v230_v47  ;;  %v214_v52 = vld [vmem:[#allocation7 + $0x30] sm:$0xff]  ;;  %v215_v53 = vld [vmem:[#allocation7 + $0x38] sm:$0xff]  ;;  %v233_v55 = vld [vmem:[#allocation7 + $0xc8] sm:$0xff] }
  0x44   :  { %420 = vmatprep.subr.bf16.mxu0 %v419_v28  ;;  %v62_v56 = vld [vmem:[#allocation2] sm:$0xff]  ;;  %v441_v57 = vpack.c.bf16 %v215_v53, %v214_v52  ;;  %v443_v58 = vpack.c.bf16 %v233_v55, %v232_v54  ;;  %v217_v60 = vld [vmem:[#allocation7 + $0x48] sm:$0xff]  ;;  %v234_v61 = vld [vmem:[#allocation7 + $0xd0] sm:$0xff] }
  0x45   :  { %434 = vmatpush3.bf16.msra.mxu1 %v433_v41  ;;  %v216_v59 = vld [vmem:[#allocation7 + $0x40] sm:$0xff]  ;;  %v235_v62 = vld [vmem:[#allocation7 + $0xd8] sm:$0xff]  ;;  %v63_v63 = vld [vmem:[#allocation2 + $0x8] sm:$0xff] }
  0x46   :  { %436 = vmatprep.subr.bf16.mxu1 %v435_v44  ;;  %v445_v1 = vpack.c.bf16 %v217_v60, %v216_v59  ;;  %v447_v2 = vpack.c.bf16 %v235_v62, %v234_v61  ;;  %v218_v3 = vld [vmem:[#allocation7 + $0x50] sm:$0xff]  ;;  %v219_v4 = vld [vmem:[#allocation7 + $0x58] sm:$0xff]  ;;  %v236_v5 = vld [vmem:[#allocation7 + $0xe0] sm:$0xff] }
  0x47   :  { %422 = vmatpush1.bf16.msra.mxu0 %v421_v39  ;;  %v237_v6 = vld [vmem:[#allocation7 + $0xe8] sm:$0xff]  ;;  %v64_v7 = vld [vmem:[#allocation2 + $0x10] sm:$0xff]  ;;  %v449_v8 = vpack.c.bf16 %v219_v4, %v218_v3  ;;  %v65_v10 = vld [vmem:[#allocation2 + $0x18] sm:$0xff] }
  0x48   :  { %424 = vmatprep.subr.bf16.mxu0 %v423_v42  ;;  %v451_v9 = vpack.c.bf16 %v237_v6, %v236_v5  ;;  %v220_v11 = vld [vmem:[#allocation7 + $0x60] sm:$0xff]  ;;  %v221_v12 = vld [vmem:[#allocation7 + $0x68] sm:$0xff]  ;;  %v238_v14 = vld [vmem:[#allocation7 + $0xf0] sm:$0xff] }
  0x49   :  { %438 = vmatpush3.bf16.msra.mxu1 %v437_v50  ;;  %v453_v13 = vpack.c.bf16 %v221_v12, %v220_v11  ;;  %v239_v15 = vld [vmem:[#allocation7 + $0xf8] sm:$0xff]  ;;  %v222_v17 = vld [vmem:[#allocation7 + $0x70] sm:$0xff]  ;;  %v86_v22 = vld [vmem:[%s674_s2] sm:$0x3] }
  0x4a   :  { %440 = vmatprep.subr.bf16.mxu1 %v439_v51  ;;  %v455_v16 = vpack.c.bf16 %v239_v15, %v238_v14  ;;  %v223_v18 = vld [vmem:[#allocation7 + $0x78] sm:$0xff]  ;;  %v95_v25 = vrot.slane %v86_v22, %v94_v23  ;;  %v362_v51 = vld [vmem:[%s676_s4] ss:$0 sm:$0xff]  ;;  %s570_s4 = smov [#allocation8]  }
  0x4b   :  { %426 = vmatpush1.bf16.msra.mxu0 %v425_v49  ;;  %v457_v19 = vpack.c.bf16 %v223_v18, %v222_v17  ;;  %s345_s8 = sshll.u32 %s570_s4, 4  ;;  %s346_s8 = int_to_ptr.vmem [resolvable:$true] %s345_s8 }
  0x4c   :  { %s534_s9 = scalar_lea.vmem %s346_s8, 512  ;;  %p539_p11 = scmp.lt.s32.totalorder %s346_s8, %s346_s8 }
  0x4d   :  { %442 = vmatpush3.bf16.msra.mxu1 %v441_v57  ;;  %p535_p10 = scmp.ne.s32.totalorder %s346_s8, %s534_s9  ;;  %p540_p12 = scmp.lt.s32.totalorder %s534_s9, %s534_s9 }
  0x4e   :  { %358 = vmatmul.mubr.msk.f32.vlgmr.msra.gmra.mrb[0].mxu0 %vm98_vm0, %v62_v56  ;;  %444 = vmatprep.subr.bf16.mxu1 %v443_v58 }
  0x4f   :  { %181 = vmatprep.mubr.f32.mxu0 %v569_v0  ;;  %p541_p13 = por %p540_p12, %p539_p11 }
  0x51   :  { %446 = vmatpush3.bf16.msra.mxu1 %v445_v1  ;;  %p542_p0 = pnand %p541_p13, %p535_p10 }
  0x52   :  { %359 = vmatmul.mubr.msk.f32.gmra.mrb[2].mxu0 %vm98_vm0, %v63_v63  ;;  %448 = vmatprep.subr.bf16.mxu1 %v447_v2 }
  0x53   :  { %187 = vmatprep.mubr.f32.mxu0 %v569_v0 }
  0x55   :  { %450 = vmatpush3.bf16.msra.mxu1 %v449_v8 }
  0x56   :  { %360 = vmatmul.mubr.msk.f32.gmra.mrb[4].mxu0 %vm98_vm0, %v64_v7  ;;  %452 = vmatprep.subr.bf16.mxu1 %v451_v9 }
  0x57   :  { %193 = vmatprep.mubr.f32.mxu0 %v569_v0  ;;  %v90_v0 = vsub.s32 0, %v89_v21 }
  0x59   :  { %454 = vmatpush3.bf16.msra.mxu1 %v453_v13  ;;  %v91_v24 = vrot.slane %v86_v22, %v90_v0 }
  0x5a   :  { %361 = vmatmul.mubr.msk.f32.gmra.mrb[6].mxu0 %vm98_vm0, %v65_v10  ;;  %456 = vmatprep.subr.bf16.mxu1 %v455_v16 }
  0x5d   :  { %458 = vmatpush3.bf16.msra.mxu1 %v457_v19 }
 0x121   :  { %v177_v26 = vpop.f32.mrb[0].mxu0 }
 0x122   :  { %v178_v27 = vadd.f32 %v177_v26, %v91_v24  ;;  %v179_v28 = vpop.f32.mrb[1].mxu0 }
 0x123   :  { %v180_v29 = vadd.f32 %v179_v28, %v95_v25 }
 0x124   :  { %v200_v32 = vmax.f32 %v178_v27, 0.0 }
 0x125   :  { %v183_v30 = vpop.f32.mrb[2].mxu0  ;;  %v201_v31 = vmax.f32 %v180_v29, 0.0 }
 0x126   :  { %v184_v33 = vadd.f32 %v183_v30, %v91_v24  ;;  %v185_v34 = vpop.f32.mrb[3].mxu0 }
 0x127   :  { %v186_v35 = vadd.f32 %v185_v34, %v95_v25  ;;  %311 = vmatprep.mubr.f32.mxu1 %v201_v31 }
 0x128   :  { %312 = vmatmul.mubr.f32.vlgmr.msra.gmra.mrb[0].mxu1 %v200_v32  ;;  %v202_v38 = vmax.f32 %v184_v33, 0.0 }
 0x129   :  { %v203_v36 = vmax.f32 %v186_v35, 0.0  ;;  %v189_v37 = vpop.f32.mrb[4].mxu0 }
 0x12a   :  { %v190_v39 = vadd.f32 %v189_v37, %v91_v24  ;;  %v191_v40 = vpop.f32.mrb[5].mxu0 }
 0x12b   :  { %v192_v41 = vadd.f32 %v191_v40, %v95_v25  ;;  %316 = vmatprep.mubr.f32.mxu1 %v203_v36 }
 0x12c   :  { %317 = vmatmul.mubr.f32.gmra.mrb[2].mxu1 %v202_v38  ;;  %v204_v44 = vmax.f32 %v190_v39, 0.0 }
 0x12d   :  { %v205_v42 = vmax.f32 %v192_v41, 0.0  ;;  %v195_v43 = vpop.f32.mrb[6].mxu0 }
 0x12e   :  { %v196_v45 = vadd.f32 %v195_v43, %v91_v24  ;;  %v197_v46 = vpop.f32.mrb[7].mxu0 }
 0x12f   :  { %v198_v47 = vadd.f32 %v197_v46, %v95_v25  ;;  %321 = vmatprep.mubr.f32.mxu1 %v205_v42 }
 0x130   :  { %322 = vmatmul.mubr.f32.gmra.mrb[4].mxu1 %v204_v44  ;;  %v206_v49 = vmax.f32 %v196_v45, 0.0 }
 0x131   :  { %v207_v48 = vmax.f32 %v198_v47, 0.0 }
 0x133   :  { %326 = vmatprep.mubr.f32.mxu1 %v207_v48 }
 0x134   :  { %327 = vmatmul.mubr.f32.gmra.mrb[6].mxu1 %v206_v49 }
 0x1fb   :  { %v395_v50 = vpop.f32.mrb[0].mxu1 }
 0x1fc   :  { %v396_v52 = vpop.f32.mrb[1].mxu1 }
 0x1fd   :  { %v397_v53 = vadd.f32 %v396_v52, %v395_v50 }
 0x1ff   :  { %v314_v54 = vadd.f32 %v397_v53, %v362_v51  ;;  %v398_v55 = vpop.f32.mrb[2].mxu1 }
 0x200   :  { %v399_v56 = vpop.f32.mrb[3].mxu1 }
 0x201   :  { %v332_v57 = vmax.f32 %v314_v54, 0.0  ;;  %v400_v58 = vadd.f32 %v399_v56, %v398_v55 }
 0x203   :  { %336 = vst [vmem:[#allocation8] sm:$0xff] %v332_v57  ;;  %v319_v59 = vadd.f32 %v400_v58, %v362_v51  ;;  %v401_v60 = vpop.f32.mrb[4].mxu1 }
 0x204   :  { %v402_v61 = vpop.f32.mrb[5].mxu1 }
 0x205   :  { %v333_v62 = vmax.f32 %v319_v59, 0.0  ;;  %v403_v63 = vadd.f32 %v402_v61, %v401_v60 }
 0x207   :  { %337 = vst [vmem:[#allocation8 + $0x8] sm:$0xff] %v333_v62  ;;  %v324_v1 = vadd.f32 %v403_v63, %v362_v51  ;;  %v404_v2 = vpop.f32.mrb[6].mxu1 }
 0x208   :  { %v405_v3 = vpop.f32.mrb[7].mxu1 }
 0x209   :  { %v334_v4 = vmax.f32 %v324_v1, 0.0  ;;  %v406_v5 = vadd.f32 %v405_v3, %v404_v2 }
 0x20b   :  { %338 = vst [vmem:[#allocation8 + $0x10] sm:$0xff] %v334_v4  ;;  %v329_v6 = vadd.f32 %v406_v5, %v362_v51 }
 0x20d   :  { %v335_v7 = vmax.f32 %v329_v6, 0.0 }
 0x20f   :  { %339 = vst [vmem:[#allocation8 + $0x18] sm:$0xff] %v335_v7 }
 0x210   :  { %545 = shalt.err (!%p542_p0)
}
 0x211   :  { %s546_s12 = scalar_lea.hbm %s677_s5, 512 }
 0x212   :  { %p547_p1 = scmp.ne.s32.totalorder %s677_s5, %s546_s12  ;;  %p550_p2 = scmp.lt.u32.totalorder %s546_s12, %s677_s5 }
 0x214   :  { %p552_p3 = pnand %p550_p2, %p547_p1 }
 0x216   :  { %555 = shalt.err (!%p552_p3)
}
 0x217   :  { %351 = dma.vmem_to_hbm [thread:$0]  %s346_s8, 512, %s677_s5, [#allocation4], %s566_s1, %s566_s1, %s567_s17  }
 0x218   :  { %560 = dma.done.wait [#allocation4], 512  }
 0x219   :  { %561 = vsyncadd [#allocation4], 4294966784 }
 0x21a   :  { %355 = vsyncpa [#allocation3], 1 }
 0x21b   :  { %356 = vsyncpa [#allocation6], 1 }
 0x21c   :  { %357 = vsyncpa [#allocation4], 1 }

</bundles_post_ra>
